<compile_context>
chip_gen: v6e
topology: v6e:2x2x1
jax: 0.10.0
libtpu: 0.0.40
codegen_flags: <defaults>
</compile_context>

<pallas_src>
import functools

import jax
import jax.numpy as jnp
from jax import lax
from jax.experimental import pallas as pl
from jax.experimental.pallas import tpu as pltpu

_LANES = 128


def _round_up(x, m):
    return (x + m - 1) // m * m


def _focal_bce_partial_kernel(x_ref, t_ref, o_ref, *, tile_rows, chunk_rows,
                              valid_in_last, unroll):
    """Fold one (tile_rows, 128) block into a lane-dense (8, 128) partial sum."""

    def accumulate(masked):
        def body(c, acc):
            r = pl.multiple_of(c * chunk_rows, chunk_rows)
            x = x_ref[pl.ds(r, chunk_rows), :].astype(jnp.float32)
            t = t_ref[pl.ds(r, chunk_rows), :].astype(jnp.float32)
            # Stable BCE-with-logits (same formulation as PyTorch):
            #   max(x, 0) - x*t + log1p(exp(-|x|))
            bce = jnp.maximum(x, 0.0) - x * t + jnp.log1p(jnp.exp(-jnp.abs(x)))
            if masked:
                # Block-local element index: tile_rows*128 << 2^31, int32-safe.
                row = lax.broadcasted_iota(jnp.int32, (chunk_rows, _LANES), 0)
                lane = lax.broadcasted_iota(jnp.int32, (chunk_rows, _LANES), 1)
                lidx = (r + row) * _LANES + lane
                bce = jnp.where(lidx < valid_in_last, bce, 0.0)
            # Sublane fold (chunk_rows, 128) -> (8, 128): pure VPU adds,
            # vreg-aligned, no cross-lane reduce.
            return acc + jnp.sum(bce.reshape(chunk_rows // 8, 8, _LANES), axis=0)

        return lax.fori_loop(0, tile_rows // chunk_rows, body,
                             jnp.zeros((8, _LANES), jnp.float32), unroll=unroll)

    if valid_in_last >= tile_rows * _LANES:
        # Fully aligned input: no block anywhere needs masking (static branch).
        o_ref[...] = accumulate(masked=False)
    else:
        is_last = pl.program_id(0) == pl.num_programs(0) - 1

        @pl.when(jnp.logical_not(is_last))
        def _():
            o_ref[...] = accumulate(masked=False)

        @pl.when(is_last)
        def _():
            o_ref[...] = accumulate(masked=True)


def focal_loss(inputs, targets, *, alpha=1.0, gamma=2.0, tile_rows=8192):
    """Scalar focal loss matching FocalLoss(alpha, gamma, reduce=False)."""
    assert inputs.shape == targets.shape
    n_elems = int(inputs.size)

    # Sublane packing of the narrowest input dtype: 8 (f32) / 16 (bf16) / 32 (i8).
    itemsize = min(inputs.dtype.itemsize, targets.dtype.itemsize)
    sub = {4: 8, 2: 16, 1: 32}.get(itemsize, 8)

    rows = pl.cdiv(n_elems, _LANES)
    rows_padded = _round_up(rows, sub)   # sublane-alignment pad only (often 0)

    # Biggest tile that fits the VMEM budget, but split so num_blocks >= 2 when
    # possible (both v7x TensorCores get work).  tr <= rows_padded always.
    tr = min(int(tile_rows), _round_up(pl.cdiv(rows_padded, 2), sub))
    tr = _round_up(tr, sub)

    # Inner-loop chunk: largest of {8,4,2,1}*sub that divides the tile.
    chunk_rows = sub
    for cand in (8 * sub, 4 * sub, 2 * sub):
        if tr % cand == 0:
            chunk_rows = cand
            break
    unroll = max(1, min(4, tr // chunk_rows))

    num_blocks = pl.cdiv(rows_padded, tr)
    # Valid elements in the final grid block (static); all other blocks are full.
    valid_in_last = n_elems - (num_blocks - 1) * tr * _LANES

    def _prep(a):
        # Keep native dtype (no upcast) -> minimal HBM traffic.  jnp.pad (a full
        # copy) only triggers for sublane-misaligned sizes; the common NN case
        # (n_elems % (sub*128) == 0) takes the zero-copy reshape path.
        flat = a.reshape(-1)
        pad = rows_padded * _LANES - n_elems
        if pad:
            flat = jnp.pad(flat, (0, pad))
        return flat.reshape(rows_padded, _LANES)

    x2 = _prep(inputs)
    t2 = _prep(targets)

    kernel = functools.partial(
        _focal_bce_partial_kernel,
        tile_rows=tr,
        chunk_rows=chunk_rows,
        valid_in_last=valid_in_last,
        unroll=unroll,
    )

    in_bytes = rows_padded * _LANES * (inputs.dtype.itemsize + targets.dtype.itemsize)
    out_bytes = num_blocks * 8 * _LANES * 4
    # Double-buffered input blocks + headroom; explicit so tr=8192 fits v5e's
    # 16 MiB default scoped VMEM and stays well under v7x's 64 MiB physical.
    vmem_limit = min(
        int(2 * tr * _LANES * (inputs.dtype.itemsize + targets.dtype.itemsize))
        + (8 << 20),
        48 << 20,
    )

    partials = pl.pallas_call(
        kernel,
        out_shape=jax.ShapeDtypeStruct((num_blocks * 8, _LANES), jnp.float32),
        grid=(num_blocks,),
        in_specs=[
            pl.BlockSpec((tr, _LANES), lambda i: (i, 0)),
            pl.BlockSpec((tr, _LANES), lambda i: (i, 0)),
        ],
        out_specs=pl.BlockSpec((8, _LANES), lambda i: (i, 0)),
        compiler_params=pltpu.CompilerParams(
            dimension_semantics=("parallel",),   # independent partials per block
            vmem_limit_bytes=vmem_limit,
        ),
        cost_estimate=pl.CostEstimate(
            flops=6 * n_elems,
            transcendentals=2 * n_elems,
            bytes_accessed=in_bytes + out_bytes,
        ),
    )(x2, t2)

    # Tiny scalar epilogue: the module applies the focal transform to the *mean*
    # BCE, not per element.
    bce_mean = jnp.sum(partials) / jnp.float32(n_elems)
    pt = jnp.exp(-bce_mean)
    return jnp.float32(alpha) * (1.0 - pt) ** jnp.float32(gamma) * bce_mean


def _focal_loss_ref(inputs, targets, alpha=1.0, gamma=2.0):
    x = inputs.astype(jnp.float32)
    t = targets.astype(jnp.float32)
    bce = jnp.maximum(x, 0.0) - x * t + jnp.log1p(jnp.exp(-jnp.abs(x)))
    bce_mean = jnp.mean(bce)
    pt = jnp.exp(-bce_mean)
    return alpha * (1.0 - pt) ** gamma * bce_mean


if __name__ == "__main__":
    key = jax.random.PRNGKey(0)
    k1, k2 = jax.random.split(key)
    # NCHW inputs, small shapes: (batch=2, channels=4, H=16, W=16)
    inputs = jax.random.normal(k1, (2, 4, 16, 16), dtype=jnp.float32)
    targets = jax.random.bernoulli(k2, p=0.5, shape=(2, 4, 16, 16)).astype(jnp.float32)

    out = focal_loss(inputs, targets, alpha=1.0, gamma=2.0)
    out = jax.block_until_ready(out)

    ref = _focal_loss_ref(inputs, targets, alpha=1.0, gamma=2.0)
    assert jnp.allclose(out, ref, rtol=1e-5, atol=1e-6), (out, ref)

    print("KERNEL_OK")
</pallas_src>

<mosaic_0001>
module attributes {stable_mosaic.version = 11 : i64} {
  func.func @_focal_bce_partial_kernel(%arg0: i32, %arg1: memref<8x128xf32, #tpu.memory_space<vmem>>, %arg2: memref<8x128xf32, #tpu.memory_space<vmem>>, %arg3: memref<8x128xf32, #tpu.memory_space<vmem>>) attributes {dimension_semantics = [#tpu.dimension_semantics<parallel>], iteration_bounds = array<i64: 2>, scalar_prefetch = 0 : i64, scratch_operands = 0 : i64, tpu.core_type = #tpu.core_type<tc>, window_params = [{transform_indices = @transform_0, window_bounds = array<i64: 8, 128>}, {transform_indices = @transform_1, window_bounds = array<i64: 8, 128>}, {transform_indices = @transform_2, window_bounds = array<i64: 8, 128>}]} {
    %cst = arith.constant 0.000000e+00 : f32
    %0 = vector.broadcast %cst : f32 to vector<8x128xf32>
    %c0_i32 = arith.constant 0 : i32
    %c8_i32 = arith.constant 8 : i32
    %1 = arith.muli %c0_i32, %c8_i32 : i32
    %2 = tpu.assume_multiple %1, 8 : i32
    %3 = arith.index_cast %2 : i32 to index
    %c0 = arith.constant 0 : index
    %4 = vector.load %arg1[%3, %c0] : memref<8x128xf32, #tpu.memory_space<vmem>>, vector<8x128xf32>
    %5 = arith.index_cast %2 : i32 to index
    %c0_0 = arith.constant 0 : index
    %6 = vector.load %arg2[%5, %c0_0] : memref<8x128xf32, #tpu.memory_space<vmem>>, vector<8x128xf32>
    %cst_1 = arith.constant 0.000000e+00 : f32
    %7 = vector.broadcast %cst_1 : f32 to vector<8x128xf32>
    %8 = arith.maximumf %4, %7 : vector<8x128xf32>
    %9 = arith.mulf %4, %6 : vector<8x128xf32>
    %10 = arith.subf %8, %9 : vector<8x128xf32>
    %11 = math.absf %4 : vector<8x128xf32>
    %cst_2 = arith.constant 0.000000e+00 : f32
    %12 = vector.broadcast %cst_2 : f32 to vector<8x128xf32>
    %13 = arith.subf %12, %11 : vector<8x128xf32>
    %14 = math.exp %13 : vector<8x128xf32>
    %15 = math.log1p %14 : vector<8x128xf32>
    %16 = arith.addf %10, %15 : vector<8x128xf32>
    %17 = vector.shape_cast %16 : vector<8x128xf32> to vector<1x8x128xf32>
    %cst_3 = arith.constant dense<0.000000e+00> : vector<8x128xf32>
    %18 = vector.multi_reduction <add>, %17, %cst_3 [0] : vector<1x8x128xf32> to vector<8x128xf32>
    %19 = arith.addf %0, %18 : vector<8x128xf32>
    %c1_i32 = arith.constant 1 : i32
    %c0_4 = arith.constant 0 : index
    %c0_5 = arith.constant 0 : index
    %20 = vector.load %arg3[%c0_4, %c0_5] : memref<8x128xf32, #tpu.memory_space<vmem>>, vector<8x128xf32>
    tpu.vector_store %arg3[%c0_4, %c0_5], %19 {strides = array<i32>} : memref<8x128xf32, #tpu.memory_space<vmem>>, vector<8x128xf32>,
    return
  }
  func.func @transform_0(%arg0: i32) -> (i32, i32) {
    %c0_i32 = arith.constant 0 : i32
    %c0_i32_0 = arith.constant 0 : i32
    return %arg0, %c0_i32 : i32, i32
  }
  func.func @transform_1(%arg0: i32) -> (i32, i32) {
    %c0_i32 = arith.constant 0 : i32
    %c0_i32_0 = arith.constant 0 : i32
    return %arg0, %c0_i32 : i32, i32
  }
  func.func @transform_2(%arg0: i32) -> (i32, i32) {
    %c0_i32 = arith.constant 0 : i32
    %c0_i32_0 = arith.constant 0 : i32
    return %arg0, %c0_i32 : i32, i32
  }
}

</mosaic_0001>

<bundles_post_ra>
// kernel: tpu_custom_call.1
= control target key start
LH: loop header
LB: loop body
LE: loop exit
PB: predicated region body
PF: predicated region fallthrough
CT: control target
= control target key end

     0   :  { %7 = vsyncpa [#allocation3], 0  ;;  %s738_s0 = inlined_call_operand.hbm [shape: f32[16,128], index: 0, kind: input, shape index: {}]   ;;  %s739_s1 = inlined_call_operand.hbm [shape: f32[16,128], index: 1, kind: input, shape index: {}]   ;;  %s740_s2 = inlined_call_operand.hbm [shape: f32[16,128], index: 2, kind: output, shape index: {}]  }
   0x1   :  { %9 = vsyncpa [#allocation3 + $0x1], 0 }
   0x2   :  { %10 = vsyncpa [#allocation6], 0 }
   0x3   :  { %12 = vsyncpa [#allocation6 + $0x1], 0 }
   0x4   :  { %13 = vsyncpa [#allocation4], 0 }
   0x5   :  { %15 = vsyncpa [#allocation4 + $0x1], 0  ;;  %s539_s9 = smov 0   ;;  %s541_s10 = smov 0  }
   0x6   :  { %s543_s11 = smov 0   ;;  %s545_s12 = smov 0  }
   0x7 LB: > { %s560_s13 = sadd.s32 4294967295, %s519_s12   ;;  %s325_s14 = sadd.s32 4294967294, %s519_s12   ;;  %s519_s12 = sphi %s545_s12, %s759_s12   ;;  %s515_s11 = sphi %s543_s11, %s758_s11   ;;  %s511_s10 = sphi %s541_s10, %s757_s10   ;;  %s507_s9 = sphi %s539_s9, %s756_s9  }
   0x8   : > { %s564_s15 = sadd.s32 1, %s519_s12   ;;  %s28_s16 = sadd.s32 1, %s515_s11 }
   0x9   : > { %s25_s17 = ssub.s32 %s519_s12, %s564_s15  ;;  %p35_p0 = scmp.ne.s32.totalorder %s515_s11, %s511_s10 }
   0xa   : > { %p26_p1 = scmp.eq.s32.totalorder %s25_s17, 0  ;;  %p36_p2 = scmp.eq.s32.totalorder %s519_s12, 0 }
   0xb   : > { %p41_p3 = scmp.ne.s32.totalorder %s511_s10, %s507_s9  ;;  %p42_p4 = scmp.eq.s32.totalorder %s560_s13, 0 }
   0xc   : > { %s576_s18 = scalar_select %p26_p1, %s515_s11, %s28_s16  }
   0xd   : > { %p578_p5 = por %p36_p2, %p35_p0  ;;  %p582_p6 = por %p42_p4, %p41_p3 }
   0xe   : > { %p91_p7 = scmp.eq.s32.totalorder %s560_s13, 1  ;;  %p97_p8 = scmp.eq.s32.totalorder %s325_s14, 1 }
   0xf   : > { %s744_s20 = scalar_select %p582_p6, 1, 0 }
  0x10   : > { %p357_p10 = scmp.lt.s32.totalorder %s519_s12, 2  ;;  %p589_p11 = por %p91_p7, %p35_p0 }
  0x11   : > { %p593_p12 = por %p97_p8, %p41_p3  ;;  %s598_s23 = sand.u32 1, %s515_s11  }
  0x12   : > { %s745_s21 = scalar_select %p589_p11, 1, 0 }
  0x13   : > { %s746_s22 = scalar_select %p593_p12, 1, 0 }
  0x14   : > { %s329_s24 = sshll.u32 %s519_s12, 7  ;;  %s328_s25 = sshll.u32 %s598_s23, 3 }
  0x15   : > { %s607_s28 = scalar_lea.hbm %s738_s0, %s329_s24  ;;  %s121_s29 = scalar_lea.vmem [#allocation2], %s328_s25 }
  0x16   : > { %s128_s30 = sshll.u32 %s121_s29, 4  ;;  %p613_p13 = pnand %p357_p10, %p578_p5  ;;  %s617_s30 = int_to_ptr.vmem [resolvable:$true] %s128_s30 }
  0x17   : > { %s118_s4 = scalar_lea.sflag [#allocation3], %s598_s23  ;;  %s395_s5 = scalar_lea.hbm %s607_s28, 128 }
  0x18   : > { %p396_p2 = scmp.ne.s32.totalorder %s607_s28, %s395_s5  ;;  %p397_p3 = pneg %p613_p13 }
  0x19   : > { %s400_s8 = scalar_lea.hbm %s738_s0, 256  ;;  %p401_p5 = scmp.lt.s32.totalorder %s607_s28, %s738_s0 }
  0x1a   : > { %p398_p4 = pnand %p397_p3, %p396_p2  ;;  %p402_p8 = scmp.lt.s32.totalorder %s400_s8, %s395_s5 }
  0x1c   : > { %p399_p7 = pneg %p398_p4  ;;  %p403_p10 = por %p402_p8, %p401_p5 }
  0x1e   : > { %p404_p9 = pnand %p403_p10, %p399_p7 }
  0x20   : > { %407 = shalt.err (!%p404_p9)
}
  0x21   : > { %s408_s17 = scalar_lea.vmem %s617_s30, 128  ;;  %s521_s19 = smov [#allocation2]  }
  0x22   : > { %p409_p0 = scmp.ne.s32.totalorder %s617_s30, %s408_s17  ;;  %s413_s26 = sshll.u32 %s521_s19, 4  ;;  %s414_s26 = int_to_ptr.vmem [resolvable:$false] %s413_s26 }
  0x23   : > { %s415_s27 = scalar_lea.vmem %s414_s26, 256  ;;  %p416_p1 = scmp.lt.s32.totalorder %s617_s30, %s414_s26 }
  0x24   : > { %p411_p2 = pnand %p409_p0, %p397_p3  ;;  %p417_p12 = scmp.lt.s32.totalorder %s415_s27, %s408_s17 }
  0x26   : > { %p412_p4 = pneg %p411_p2  ;;  %p418_p11 = por %p417_p12, %p416_p1 }
  0x28   : > { %p419_p5 = pnand %p418_p11, %p412_p4 }
  0x2a   : > { %422 = shalt.err (!%p419_p5)
}
  0x2b   : > { %349 = dma.hbm_to_vmem [thread:$0]  (!%p613_p13), %s607_s28, 128, %s617_s30, %s118_s4  }
  0x2c   : > { %p748_p9 = scmp.lt.s32.totalorder %s519_s12, 3  ;;  %p749_p0 = scmp.ge.s32.totalorder %s519_s12, 1 }
  0x2d   : > { %s659_s7 = scalar_lea.hbm %s739_s1, %s329_s24  ;;  %s139_s8 = scalar_lea.vmem [#allocation5], %s328_s25 }
  0x2e   : > { %p650_p7 = pnand %p749_p0, %p748_p9  ;;  %s146_s14 = sshll.u32 %s139_s8, 4  ;;  %s147_s14 = int_to_ptr.vmem [resolvable:$true] %s146_s14 }
  0x2f   : > { %s136_s28 = scalar_lea.sflag [#allocation6], %s598_s23  ;;  %s423_s30 = scalar_lea.hbm %s659_s7, 128 }
  0x30   : > { %s750_s29 = scalar_select %p650_p7, 1, 0 }
  0x31   : > { %p424_p11 = scmp.ne.s32.totalorder %s659_s7, %s423_s30  ;;  %s428_s17 = scalar_lea.hbm %s739_s1, 256 }
  0x32   : > { %p429_p8 = scmp.lt.s32.totalorder %s659_s7, %s739_s1  ;;  %p430_p10 = scmp.lt.s32.totalorder %s428_s17, %s423_s30 }
  0x33   : > { %p426_p12 = pnand %p424_p11, %p397_p3 }
  0x34   : > { %p431_p2 = por %p430_p10, %p429_p8 }
  0x35   : > { %p427_p1 = pneg %p426_p12 }
  0x37   : > { %p432_p4 = pnand %p431_p2, %p427_p1 }
  0x39   : > { %435 = shalt.err (!%p432_p4)
}
  0x3a   : > { %s436_s25 = scalar_lea.vmem %s147_s14, 128  ;;  %s522_s23 = smov [#allocation5]  }
  0x3b   : > { %p437_p5 = scmp.ne.s32.totalorder %s147_s14, %s436_s25  ;;  %s441_s26 = sshll.u32 %s522_s23, 4  ;;  %s442_s26 = int_to_ptr.vmem [resolvable:$false] %s441_s26 }
  0x3c   : > { %s443_s27 = scalar_lea.vmem %s442_s26, 256  ;;  %p444_p11 = scmp.lt.s32.totalorder %s147_s14, %s442_s26 }
  0x3d   : > { %p439_p9 = pnand %p437_p5, %p397_p3  ;;  %p445_p12 = scmp.lt.s32.totalorder %s443_s27, %s436_s25 }
  0x3f   : > { %p440_p0 = pneg %p439_p9  ;;  %p446_p6 = por %p445_p12, %p444_p11 }
  0x41   : > { %p447_p7 = pnand %p446_p6, %p440_p0 }
  0x43   : > { %450 = shalt.err (!%p447_p7)
}
  0x44   : > { %352 = dma.hbm_to_vmem [thread:$0]  (!%p613_p13), %s659_s7, 128, %s147_s14, %s136_s28  }
  0x45   : > { %p751_p1 = scmp.ne.s32.totalorder %s750_s29, 0 }
  0x46   : > { %s685_s5 = sand.u32 (!%p751_p1), 1, %s511_s10   ;;  %p752_p6 = scmp.ne.s32.totalorder (!%p751_p1), %s744_s20, 0 }
  0x47   : > { %155 = sbr.rel (%p751_p1) target bundleno = 134 (0x86), region = 28  ;;  %s688_s6 = sshll.u32 (!%p751_p1), %s685_s5, 3 }
  0x48   : > { %s158_s8 = scalar_lea.sflag (!%p751_p1), [#allocation3], %s685_s5  ;;  %s161_s30 = scalar_lea.vmem (!%p751_p1), [#allocation2], %s688_s6 }
  0x4c   : > { %494 = dma.done.wait (%p752_p6), %s158_s8, 128  }
  0x4d   : > { %496 = vsyncadd (%p752_p6), %s158_s8, 4294967168  ;;  %s167_s3 = scalar_lea.sflag [#allocation6], %s685_s5  ;;  %s170_s29 = scalar_lea.vmem [#allocation5], %s688_s6 }
  0x4e   : > { %498 = dma.done.wait (%p752_p6), %s167_s3, 128  }
  0x4f   : > { %500 = vsyncadd (%p752_p6), %s167_s3, 4294967168  ;;  %v196_v0 = vld [vmem:[%s161_s30] sm:$0xff]  ;;  %v197_v7 = vld [vmem:[%s170_s29] sm:$0xff]  ;;  %s195_s20 = scalar_lea.vmem [#allocation7], %s688_s6  ;;  %s337_s14 = sshll.u32 %s560_s13, 7 }
  0x50   : > { %v201_v1 = vand.u32 2147483647, %v196_v0  ;;  %v198_v9 = vmax.f32 %v196_v0, 0.0  ;;  %v199_v10 = vmul.f32 %v197_v7, %v196_v0  ;;  %s232_s7 = sshll.u32 %s195_s20, 4  ;;  %s230_s16 = scalar_lea.hbm %s740_s2, %s337_s14  ;;  %s233_s7 = int_to_ptr.vmem [resolvable:$true] %s232_s7 }
  0x51   : > { %s219_s17 = scalar_lea.sflag [#allocation4], %s685_s5  ;;  %s451_s24 = scalar_lea.vmem %s233_s7, 128 }
  0x52   : > { %v202_v2 = vsub.f32 0.0, %v201_v1  ;;  %v200_v14 = vsub.f32 %v198_v9, %v199_v10  ;;  %p452_p13 = scmp.ne.s32.totalorder %s233_s7, %s451_s24  ;;  %p753_p3 = scmp.ne.s32.totalorder %s745_s21, 0 }
  0x53   : > { %s523_s19 = smov [#allocation7]  }
  0x54   : > { %v203_v3 = vmul.f32 1.442695, %v202_v2  ;;  %p453_p7 = pnand %p452_p13, %p753_p3  ;;  %s455_s25 = sshll.u32 %s523_s19, 4  ;;  %s456_s25 = int_to_ptr.vmem [resolvable:$false] %s455_s25 }
  0x55   : > { %s457_s23 = scalar_lea.vmem %s456_s25, 256  ;;  %p458_p10 = scmp.lt.s32.totalorder %s233_s7, %s456_s25 }
  0x56   : > { %391 = vpow2.f32 %v203_v3  ;;  %p454_p8 = pneg %p453_p7  ;;  %p459_p2 = scmp.lt.s32.totalorder %s457_s23, %s451_s24 }
  0x58   : > { %p460_p4 = por %p459_p2, %p458_p10 }
  0x5a   : > { %p461_p5 = pnand %p460_p4, %p454_p8 }
  0x63   : > { %v392_v4 = vpop.eup %391 }
  0x64   : > { %v205_v5 = vadd.f32 1.0, %v392_v4  ;;  %v208_v6 = vmul.f32 -0.5, %v392_v4  ;;  %v211_v11 = vand.u32 2147483647, %v392_v4 }
  0x66   : > { %393 = vlog2.f32 %v205_v5  ;;  %v209_v8 = vadd.f32 1.0, %v208_v6  ;;  %vm212_vm0 = vcmp.lt.f32.partialorder %v211_v11, 0.0004427343 }
  0x68   : > { %v210_v12 = vmul.f32 %v392_v4, %v209_v8 }
  0x73   : > { %v394_v13 = vpop.eup %393 }
  0x74   : > { %v207_v15 = vmul.f32 0.6931472, %v394_v13 }
  0x76   : > { %v213_v16 = vsel %vm212_vm0, %v210_v12, %v207_v15 }
  0x77   : > { %v214_v17 = vadd.f32 %v213_v16, %v200_v14 }
  0x79   : > { %217 = vst [vmem:[%s195_s20] sm:$0xff] %v214_v17 }
  0x7a   : > { %464 = shalt.err (!%p461_p5)
}
  0x7b   : > { %s465_s13 = scalar_lea.hbm %s230_s16, 128  ;;  %s469_s5 = scalar_lea.hbm %s740_s2, 256 }
  0x7c   : > { %p466_p9 = scmp.ne.s32.totalorder %s230_s16, %s465_s13  ;;  %p470_p12 = scmp.lt.s32.totalorder %s230_s16, %s740_s2 }
  0x7d   : > { %p471_p1 = scmp.lt.s32.totalorder %s469_s5, %s465_s13 }
  0x7e   : > { %p467_p0 = pnand %p466_p9, %p753_p3 }
  0x7f   : > { %p472_p6 = por %p471_p1, %p470_p12 }
  0x80   : > { %p468_p11 = pneg %p467_p0 }
  0x82   : > { %p473_p13 = pnand %p472_p6, %p468_p11 }
  0x84   : > { %476 = shalt.err (!%p473_p13)
}
  0x85   : > { %344 = dma.vmem_to_hbm [thread:$0]  (%p753_p3), %s233_s7, 128, %s230_s16, %s219_s17  }
  0x86 PF: > { %s244_s30 = sand.u32 1, %s507_s9   ;;  %p754_p7 = scmp.ne.s32.totalorder %s746_s22, 0 }
  0x87   : > { %p755_p8 = scmp.ge.s32.totalorder %s519_s12, 2  ;;  %s245_s3 = scalar_lea.sflag [#allocation4], %s244_s30 }
  0x89   : > { %p354_p10 = pnand %p755_p8, %p754_p7 }
  0x8b   : > { %p355_p2 = pneg %p354_p10 }
  0x8d   : > { %502 = dma.done.wait (%p355_p2), %s245_s3, 128  }
  0x8e   : > { %504 = vsyncadd (%p355_p2), %s245_s3, 4294967168  ;;  %p18_p4 = scmp.ge.s32.totalorder %s564_s15, 4   ;;  %s756_s9 = smov %s511_s10 }
  0x8f   : > { %s757_s10 = smov %s515_s11  ;;  %s758_s11 = smov %s576_s18 }
  0x90   : > { %s759_s12 = smov %s564_s15  ;;  %20 = sbr.rel (!%p18_p4) target bundleno = 7 (0x7), region = 86 }
  0x95   :  { %250 = vsyncpa [#allocation3], 1 }
  0x96   :  { %252 = vsyncpa [#allocation3 + $0x1], 1 }
  0x97   :  { %253 = vsyncpa [#allocation6], 1 }
  0x98   :  { %255 = vsyncpa [#allocation6 + $0x1], 1 }
  0x99   :  { %256 = vsyncpa [#allocation4], 1 }
  0x9a   :  { %258 = vsyncpa [#allocation4 + $0x1], 1 }

</bundles_post_ra>
